<compile_context>
chip_gen: v5e
topology: v5e:2x2
jax: 0.10.0
libtpu: 0.0.40
codegen_flags: <defaults>
</compile_context>

<pallas_src>
import functools

import jax
import jax.numpy as jnp
from jax.experimental import pallas as pl
from jax.experimental.pallas import tpu as pltpu

_LANE = 128
_SUBLANE = 8


def _round_up(n, m):
    return ((n + m - 1) // m) * m


def coupling_kernel(num_linear, d, d_pad, x_ref, mask_ref, *rest):
    # rest layout: fused weights [num_linear] (bf16), fused biases [num_linear]
    # (f32), then y_ref, ld_ref.
    ws = [rest[i][...] for i in range(num_linear)]                  # VMEM-resident
    bs = [rest[num_linear + i][...] for i in range(num_linear)]
    y_ref = rest[2 * num_linear]
    ld_ref = rest[2 * num_linear + 1]

    x = x_ref[...]            # (tb, D) f32 — true feature width, no lane padding
    mask = mask_ref[...]      # (1,  D) f32, broadcasts over batch rows

    x_masked = x * mask

    # Fused (scale || translation) MLP: bf16 inputs on the MXU, f32 accumulate,
    # bias-add / ReLU in f32 on the VPU (v5e-safe).
    h = x_masked
    for i in range(num_linear):
        z = jnp.dot(h.astype(jnp.bfloat16), ws[i],
                    preferred_element_type=jnp.float32) + bs[i]
        h = jnp.maximum(z, 0.0) if i < num_linear - 1 else z
    st = h                                    # (tb, 2*d_pad): [s_raw | t]

    # Padded columns of s_raw are exactly 0 (zero weight cols + zero bias), so
    # tanh(0)=0 there and the lane-sum over d_pad equals the true log-det.
    s_full = jnp.tanh(st[:, :d_pad])          # (tb, d_pad), lane-aligned slice
    s = s_full[:, :d]                         # (tb, D)
    t = st[:, d_pad:d_pad + d]                # (tb, D), offset d_pad is aligned

    y_ref[...] = x_masked + (1.0 - mask) * (x * jnp.exp(s) + t)
    ld_ref[...] = jnp.sum(s_full, axis=1, keepdims=True)    # (tb, 1)


def fuse_coupling_params(s_ws, s_bs, t_ws, t_bs):
    """Fuse the scale and translation MLPs into one weight stack.

    Layer 0: rows = true input dim D (shared input), scale cols [0:HID),
    translation cols [HID:2*HID) inside a single 128-lane hidden block.
    Hidden layers: (128, 128) block-diagonal at row/col offsets 0 and HID.
    Final layer: (128, 2*d_pad) so [s | t] split at a lane-aligned boundary.
    """
    num_linear = len(s_ws)
    d_in = s_ws[0].shape[0]
    d_out = s_ws[-1].shape[1]
    hid = s_ws[0].shape[1] if num_linear > 1 else 0
    d_pad = _round_up(d_out, _LANE)
    hid_fused = _round_up(2 * hid, _LANE) if num_linear > 1 else 0

    fws, fbs = [], []
    for i in range(num_linear):
        last = i == num_linear - 1
        rows = d_in if i == 0 else hid_fused
        cols = 2 * d_pad if last else hid_fused
        t_row = 0 if i == 0 else hid
        t_col = d_pad if last else hid

        sw = s_ws[i].astype(jnp.float32)
        tw = t_ws[i].astype(jnp.float32)
        sb = s_bs[i].reshape(1, -1).astype(jnp.float32)
        tb_ = t_bs[i].reshape(1, -1).astype(jnp.float32)

        w = jnp.zeros((rows, cols), jnp.float32)
        w = w.at[:sw.shape[0], :sw.shape[1]].set(sw)
        w = w.at[t_row:t_row + tw.shape[0], t_col:t_col + tw.shape[1]].set(tw)
        b = jnp.zeros((1, cols), jnp.float32)
        b = b.at[:, :sb.shape[1]].set(sb)
        b = b.at[:, t_col:t_col + tb_.shape[1]].set(tb_)

        fws.append(w.astype(jnp.bfloat16))    # bf16 weights feed the MXU
        fbs.append(b)                         # f32 biases
    return fws, fbs, d_pad


def coupling_layer_forward(x, mask, s_ws, s_bs, t_ws, t_bs, *, batch_tile=1024):
    B, D = x.shape
    fws, fbs, d_pad = fuse_coupling_params(s_ws, s_bs, t_ws, t_bs)
    assert fws[-1].shape[1] == 2 * d_pad, "coupling layer: output_dim must equal input_dim"
    num_linear = len(fws)

    # Batch tile: multiple of 8 sublanes; whole-batch when small.
    tb = min(batch_tile, _round_up(B, _SUBLANE))
    b_pad = _round_up(B, tb)
    grid = (b_pad // tb,)

    x_p = jnp.pad(x.astype(jnp.float32), ((0, b_pad - B), (0, 0)))   # no lane padding
    mask_r = jnp.asarray(mask, jnp.float32).reshape(1, D)

    operands = [x_p, mask_r] + list(fws) + list(fbs)
    in_specs = (
        [pl.BlockSpec((tb, D), lambda i: (i, 0)),        # streamed batch tiles (true D width)
         pl.BlockSpec((1, D), lambda i: (0, 0))]         # resident mask
        + [pl.BlockSpec(w.shape, lambda i: (0, 0)) for w in fws]   # resident weights
        + [pl.BlockSpec(b.shape, lambda i: (0, 0)) for b in fbs]   # resident biases
    )

    y_p, ld_p = pl.pallas_call(
        functools.partial(coupling_kernel, num_linear, D, d_pad),
        out_shape=(
            jax.ShapeDtypeStruct((b_pad, D), jnp.float32),   # y at true D width
            jax.ShapeDtypeStruct((b_pad, 1), jnp.float32),   # log-det column (4 bytes/row)
        ),
        grid=grid,
        in_specs=in_specs,
        out_specs=(
            pl.BlockSpec((tb, D), lambda i: (i, 0)),
            pl.BlockSpec((tb, 1), lambda i: (i, 0)),
        ),
        compiler_params=pltpu.CompilerParams(
            dimension_semantics=("parallel",),   # megacore sharding on v7x
        ),
    )(*operands)

    return y_p[:B], ld_p[:B, 0]


def init_mlp_params(key, in_dim, out_dim, hid_dim, num_hidden_layers):
    """Deterministic synthetic parameter init (Glorot-ish scaled normals)."""
    dims = [in_dim] + [hid_dim] * num_hidden_layers + [out_dim]
    ws, bs = [], []
    for i in range(len(dims) - 1):
        key, kw, kb = jax.random.split(key, 3)
        scale = 1.0 / jnp.sqrt(jnp.float32(dims[i]))
        ws.append(jax.random.normal(kw, (dims[i], dims[i + 1]), jnp.float32) * scale)
        bs.append(jax.random.normal(kb, (1, dims[i + 1]), jnp.float32) * 0.01)
    return ws, bs, key


def reference_forward(x, mask, s_ws, s_bs, t_ws, t_bs):
    """Pure-JAX reference with the same mixed-precision policy as the kernel
    (bf16 matmul inputs, f32 accumulate / elementwise) for a tight structural
    check of the fusion, lane padding, masking and log-det."""
    def mlp(h, ws, bs):
        n = len(ws)
        for i in range(n):
            o = jnp.dot(h.astype(jnp.bfloat16), ws[i].astype(jnp.bfloat16),
                        preferred_element_type=jnp.float32) + bs[i].reshape(1, -1)
            h = jnp.maximum(o, 0.0) if i < n - 1 else o
        return h

    m = mask.reshape(1, -1).astype(jnp.float32)
    xm = x * m
    s = jnp.tanh(mlp(xm, s_ws, s_bs))
    t = mlp(xm, t_ws, t_bs)
    y = xm + (1.0 - m) * (x * jnp.exp(s) + t)
    return y, s.sum(axis=1)


if __name__ == "__main__":
    # Small shapes consistent with the module: flow over D-dim feature vectors.
    B, D, HID, NUM_HIDDEN = 8, 16, 32, 2

    key = jax.random.PRNGKey(0)
    key, kx = jax.random.split(key)
    x = jax.random.normal(kx, (B, D), jnp.float32)

    # Alternating binary mask (checkerboard over features), as in RealNVP.
    mask = (jnp.arange(D) % 2).astype(jnp.float32)

    s_ws, s_bs, key = init_mlp_params(key, D, D, HID, NUM_HIDDEN)
    t_ws, t_bs, key = init_mlp_params(key, D, D, HID, NUM_HIDDEN)

    y, logdet = coupling_layer_forward(x, mask, s_ws, s_bs, t_ws, t_bs)
    y = jax.block_until_ready(y)
    logdet = jax.block_until_ready(logdet)

    y_ref, ld_ref = reference_forward(x, mask, s_ws, s_bs, t_ws, t_bs)
    assert y.shape == (B, D) and logdet.shape == (B,)
    assert jnp.allclose(y, y_ref, atol=1e-3, rtol=1e-3), \
        float(jnp.max(jnp.abs(y - y_ref)))
    assert jnp.allclose(logdet, ld_ref, atol=1e-3, rtol=1e-3), \
        float(jnp.max(jnp.abs(logdet - ld_ref)))

    # TODO(synk): inverse() path not implemented (only forward required here).
    print("KERNEL_OK")
</pallas_src>

<mosaic_0001>
module attributes {stable_mosaic.version = 11 : i64} {
  func.func @coupling_kernel(%arg0: i32, %arg1: memref<8x16xf32, #tpu.memory_space<vmem>>, %arg2: memref<1x16xf32, #tpu.memory_space<vmem>>, %arg3: memref<16x128xbf16, #tpu.memory_space<vmem>>, %arg4: memref<128x128xbf16, #tpu.memory_space<vmem>>, %arg5: memref<128x256xbf16, #tpu.memory_space<vmem>>, %arg6: memref<1x128xf32, #tpu.memory_space<vmem>>, %arg7: memref<1x128xf32, #tpu.memory_space<vmem>>, %arg8: memref<1x256xf32, #tpu.memory_space<vmem>>, %arg9: memref<8x16xf32, #tpu.memory_space<vmem>>, %arg10: memref<8x1xf32, #tpu.memory_space<vmem>>) attributes {dimension_semantics = [#tpu.dimension_semantics<parallel>], iteration_bounds = array<i64: 1>, scalar_prefetch = 0 : i64, scratch_operands = 0 : i64, tpu.core_type = #tpu.core_type<tc>, window_params = [{transform_indices = @transform_0, window_bounds = array<i64: 8, 16>}, {pipeline_mode = #tpu.pipeline_mode<synchronous>, transform_indices = @transform_1, window_bounds = array<i64: 1, 16>}, {pipeline_mode = #tpu.pipeline_mode<synchronous>, transform_indices = @transform_2, window_bounds = array<i64: 16, 128>}, {pipeline_mode = #tpu.pipeline_mode<synchronous>, transform_indices = @transform_3, window_bounds = array<i64: 128, 128>}, {pipeline_mode = #tpu.pipeline_mode<synchronous>, transform_indices = @transform_4, window_bounds = array<i64: 128, 256>}, {pipeline_mode = #tpu.pipeline_mode<synchronous>, transform_indices = @transform_5, window_bounds = array<i64: 1, 128>}, {pipeline_mode = #tpu.pipeline_mode<synchronous>, transform_indices = @transform_6, window_bounds = array<i64: 1, 128>}, {pipeline_mode = #tpu.pipeline_mode<synchronous>, transform_indices = @transform_7, window_bounds = array<i64: 1, 256>}, {transform_indices = @transform_8, window_bounds = array<i64: 8, 16>}, {transform_indices = @transform_9, window_bounds = array<i64: 8, 1>}]} {
    %c0 = arith.constant 0 : index
    %c0_0 = arith.constant 0 : index
    %0 = vector.load %arg3[%c0, %c0_0] : memref<16x128xbf16, #tpu.memory_space<vmem>>, vector<16x128xbf16>
    %c0_1 = arith.constant 0 : index
    %c0_2 = arith.constant 0 : index
    %1 = vector.load %arg4[%c0_1, %c0_2] : memref<128x128xbf16, #tpu.memory_space<vmem>>, vector<128x128xbf16>
    %c0_3 = arith.constant 0 : index
    %c0_4 = arith.constant 0 : index
    %2 = vector.load %arg5[%c0_3, %c0_4] : memref<128x256xbf16, #tpu.memory_space<vmem>>, vector<128x256xbf16>
    %c0_5 = arith.constant 0 : index
    %c0_6 = arith.constant 0 : index
    %3 = vector.load %arg6[%c0_5, %c0_6] : memref<1x128xf32, #tpu.memory_space<vmem>>, vector<1x128xf32>
    %c0_7 = arith.constant 0 : index
    %c0_8 = arith.constant 0 : index
    %4 = vector.load %arg7[%c0_7, %c0_8] : memref<1x128xf32, #tpu.memory_space<vmem>>, vector<1x128xf32>
    %c0_9 = arith.constant 0 : index
    %c0_10 = arith.constant 0 : index
    %5 = vector.load %arg8[%c0_9, %c0_10] : memref<1x256xf32, #tpu.memory_space<vmem>>, vector<1x256xf32>
    %c0_11 = arith.constant 0 : index
    %c0_12 = arith.constant 0 : index
    %6 = vector.load %arg1[%c0_11, %c0_12] : memref<8x16xf32, #tpu.memory_space<vmem>>, vector<8x16xf32>
    %c0_13 = arith.constant 0 : index
    %c0_14 = arith.constant 0 : index
    %7 = vector.load %arg2[%c0_13, %c0_14] : memref<1x16xf32, #tpu.memory_space<vmem>>, vector<1x16xf32>
    %8 = vector.broadcast %7 : vector<1x16xf32> to vector<8x16xf32>
    %9 = arith.mulf %6, %8 : vector<8x16xf32>
    %10 = arith.truncf %9 : vector<8x16xf32> to vector<8x16xbf16>
    %cst = arith.constant dense<0.000000e+00> : vector<8x128xf32>
    %11 = tpu.matmul %10, %0, %cst {dimension_numbers = #tpu.dot_dimension_numbers<[1], [0], [0], [1], [0, 0, 1, 1], [], []>} : vector<8x16xbf16>, vector<16x128xbf16>, vector<8x128xf32> -> vector<8x128xf32>
    %12 = vector.broadcast %3 : vector<1x128xf32> to vector<8x128xf32>
    %13 = arith.addf %11, %12 : vector<8x128xf32>
    %cst_15 = arith.constant 0.000000e+00 : f32
    %14 = vector.broadcast %cst_15 : f32 to vector<8x128xf32>
    %15 = arith.maximumf %13, %14 : vector<8x128xf32>
    %16 = arith.truncf %15 : vector<8x128xf32> to vector<8x128xbf16>
    %cst_16 = arith.constant dense<0.000000e+00> : vector<8x128xf32>
    %17 = tpu.matmul %16, %1, %cst_16 {dimension_numbers = #tpu.dot_dimension_numbers<[1], [0], [0], [1], [0, 0, 1, 1], [], []>} : vector<8x128xbf16>, vector<128x128xbf16>, vector<8x128xf32> -> vector<8x128xf32>
    %18 = vector.broadcast %4 : vector<1x128xf32> to vector<8x128xf32>
    %19 = arith.addf %17, %18 : vector<8x128xf32>
    %cst_17 = arith.constant 0.000000e+00 : f32
    %20 = vector.broadcast %cst_17 : f32 to vector<8x128xf32>
    %21 = arith.maximumf %19, %20 : vector<8x128xf32>
    %22 = arith.truncf %21 : vector<8x128xf32> to vector<8x128xbf16>
    %cst_18 = arith.constant dense<0.000000e+00> : vector<8x256xf32>
    %23 = tpu.matmul %22, %2, %cst_18 {dimension_numbers = #tpu.dot_dimension_numbers<[1], [0], [0], [1], [0, 0, 1, 1], [], []>} : vector<8x128xbf16>, vector<128x256xbf16>, vector<8x256xf32> -> vector<8x256xf32>
    %24 = vector.broadcast %5 : vector<1x256xf32> to vector<8x256xf32>
    %25 = arith.addf %23, %24 : vector<8x256xf32>
    %26 = vector.extract_strided_slice %25 {offsets = [0, 0], sizes = [8, 128], strides = [1, 1]} : vector<8x256xf32> to vector<8x128xf32>
    %27 = math.tanh %26 : vector<8x128xf32>
    %28 = vector.extract_strided_slice %27 {offsets = [0, 0], sizes = [8, 16], strides = [1, 1]} : vector<8x128xf32> to vector<8x16xf32>
    %29 = vector.extract_strided_slice %25 {offsets = [0, 128], sizes = [8, 16], strides = [1, 1]} : vector<8x256xf32> to vector<8x16xf32>
    %cst_19 = arith.constant 1.000000e+00 : f32
    %30 = vector.broadcast %cst_19 : f32 to vector<1x16xf32>
    %31 = arith.subf %30, %7 : vector<1x16xf32>
    %32 = math.exp %28 : vector<8x16xf32>
    %33 = arith.mulf %6, %32 : vector<8x16xf32>
    %34 = arith.addf %33, %29 : vector<8x16xf32>
    %35 = vector.broadcast %31 : vector<1x16xf32> to vector<8x16xf32>
    %36 = arith.mulf %35, %34 : vector<8x16xf32>
    %37 = arith.addf %9, %36 : vector<8x16xf32>
    %c0_20 = arith.constant 0 : index
    %c0_21 = arith.constant 0 : index
    %38 = vector.load %arg9[%c0_20, %c0_21] : memref<8x16xf32, #tpu.memory_space<vmem>>, vector<8x16xf32>
    tpu.vector_store %arg9[%c0_20, %c0_21], %37 {strides = array<i32>} : memref<8x16xf32, #tpu.memory_space<vmem>>, vector<8x16xf32>,
    %cst_22 = arith.constant dense<0.000000e+00> : vector<8xf32>
    %39 = vector.multi_reduction <add>, %27, %cst_22 [1] : vector<8x128xf32> to vector<8xf32>
    %40 = vector.shape_cast %39 : vector<8xf32> to vector<8x1xf32>
    %c0_23 = arith.constant 0 : index
    %c0_24 = arith.constant 0 : index
    %41 = vector.load %arg10[%c0_23, %c0_24] : memref<8x1xf32, #tpu.memory_space<vmem>>, vector<8x1xf32>
    tpu.vector_store %arg10[%c0_23, %c0_24], %40 {strides = array<i32>} : memref<8x1xf32, #tpu.memory_space<vmem>>, vector<8x1xf32>,
    return
  }
  func.func @transform_0(%arg0: i32) -> (i32, i32) {
    %c0_i32 = arith.constant 0 : i32
    %c0_i32_0 = arith.constant 0 : i32
    return %arg0, %c0_i32 : i32, i32
  }
  func.func @transform_1(%arg0: i32) -> (i32, i32) {
    %c0_i32 = arith.constant 0 : i32
    %c0_i32_0 = arith.constant 0 : i32
    %c0_i32_1 = arith.constant 0 : i32
    return %c0_i32, %c0_i32_0 : i32, i32
  }
  func.func @transform_2(%arg0: i32) -> (i32, i32) {
    %c0_i32 = arith.constant 0 : i32
    %c0_i32_0 = arith.constant 0 : i32
    %c0_i32_1 = arith.constant 0 : i32
    return %c0_i32, %c0_i32_0 : i32, i32
  }
  func.func @transform_3(%arg0: i32) -> (i32, i32) {
    %c0_i32 = arith.constant 0 : i32
    %c0_i32_0 = arith.constant 0 : i32
    %c0_i32_1 = arith.constant 0 : i32
    return %c0_i32, %c0_i32_0 : i32, i32
  }
  func.func @transform_4(%arg0: i32) -> (i32, i32) {
    %c0_i32 = arith.constant 0 : i32
    %c0_i32_0 = arith.constant 0 : i32
    %c0_i32_1 = arith.constant 0 : i32
    return %c0_i32, %c0_i32_0 : i32, i32
  }
  func.func @transform_5(%arg0: i32) -> (i32, i32) {
    %c0_i32 = arith.constant 0 : i32
    %c0_i32_0 = arith.constant 0 : i32
    %c0_i32_1 = arith.constant 0 : i32
    return %c0_i32, %c0_i32_0 : i32, i32
  }
  func.func @transform_6(%arg0: i32) -> (i32, i32) {
    %c0_i32 = arith.constant 0 : i32
    %c0_i32_0 = arith.constant 0 : i32
    %c0_i32_1 = arith.constant 0 : i32
    return %c0_i32, %c0_i32_0 : i32, i32
  }
  func.func @transform_7(%arg0: i32) -> (i32, i32) {
    %c0_i32 = arith.constant 0 : i32
    %c0_i32_0 = arith.constant 0 : i32
    %c0_i32_1 = arith.constant 0 : i32
    return %c0_i32, %c0_i32_0 : i32, i32
  }
  func.func @transform_8(%arg0: i32) -> (i32, i32) {
    %c0_i32 = arith.constant 0 : i32
    %c0_i32_0 = arith.constant 0 : i32
    return %arg0, %c0_i32 : i32, i32
  }
  func.func @transform_9(%arg0: i32) -> (i32, i32) {
    %c0_i32 = arith.constant 0 : i32
    %c0_i32_0 = arith.constant 0 : i32
    return %arg0, %c0_i32 : i32, i32
  }
}

</mosaic_0001>

<bundles_post_ra>
// kernel: tpu_custom_call.1
= control target key start
LH: loop header
LB: loop body
LE: loop exit
PB: predicated region body
PF: predicated region fallthrough
CT: control target
= control target key end

     0   :  { %15 = vsyncpa [#allocation3], 0  ;;  %s791_s0 = inlined_call_operand.hbm [shape: f32[8,16], index: 0, kind: input, shape index: {}]   ;;  %s792_s1 = inlined_call_operand.hbm [shape: f32[1,16], index: 1, kind: input, shape index: {}]   ;;  %s793_s2 = inlined_call_operand.hbm [shape: bf16[16,128], index: 2, kind: input, shape index: {}]   ;;  %s794_s3 = inlined_call_operand.hbm [shape: bf16[128,128], index: 3, kind: input, shape index: {}]   ;;  %s795_s4 = inlined_call_operand.hbm [shape: bf16[128,256], index: 4, kind: input, shape index: {}]   ;;  %s796_s5 = inlined_call_operand.vmem [shape: f32[1,128], index: 5, kind: input, shape index: {}]   ;;  %s797_s6 = inlined_call_operand.vmem [shape: f32[1,128], index: 6, kind: input, shape index: {}]   ;;  %s798_s7 = inlined_call_operand.vmem [shape: f32[1,256], index: 7, kind: input, shape index: {}]   ;;  %s799_s8 = inlined_call_operand.hbm [shape: f32[8,16], index: 8, kind: output, shape index: {0}]   ;;  %s800_s9 = inlined_call_operand.vmem [shape: f32[8,1], index: 9, kind: output, shape index: {1}]  }
   0x1   :  { %16 = vsyncpa [#allocation6], 0 }
   0x2   :  { %17 = vsyncpa [#allocation9], 0  ;;  %s35_s11 = sshll.u32 %s792_s1, 4  ;;  %s36_s11 = int_to_ptr.hbm [resolvable:$true] %s35_s11 }
   0x3   :  { %18 = vsyncpa [#allocation4], 0  ;;  %s690_s12 = smov [#allocation5]   ;;  %s58_s16 = sshll.u32 %s794_s3, 4  ;;  %s59_s16 = int_to_ptr.hbm [resolvable:$true] %s58_s16 }
   0x4   :  { %s37_s13 = sshll.u32 %s690_s12, 4  ;;  %s691_s17 = smov [#allocation8]   ;;  %s38_s13 = int_to_ptr.vmem [resolvable:$true] %s37_s13 }
   0x5   :  { %40 = dma.hbm_to_vmem [thread:$0]  %s36_s11, 16, %s38_s13, [#allocation6]  }
   0x6   :  { %s60_s18 = sshll.u32 %s691_s17, 4  ;;  %s24_s21 = sshll.u32 %s791_s0, 4  ;;  %s61_s18 = int_to_ptr.vmem [resolvable:$true] %s60_s18  ;;  %s25_s21 = int_to_ptr.hbm [resolvable:$true] %s24_s21 }
   0x7   :  { %s692_s1 = smov 64   ;;  %s693_s22 = smov 4  }
   0x8   :  { %66 = dma.hbm_to_vmem [thread:$0]  %s59_s16, 1024, %s61_s18, [#allocation9], %s692_s1, %s692_s1, %s693_s22  }
   0x9   :  { %s45_s25 = sshll.u32 %s793_s2, 4  ;;  %s694_s26 = smov [#allocation2]   ;;  %s46_s25 = int_to_ptr.hbm [resolvable:$true] %s45_s25 }
   0xa   :  { %s26_s27 = sshll.u32 %s694_s26, 4  ;;  %s695_s3 = smov [#allocation7]   ;;  %s27_s27 = int_to_ptr.vmem [resolvable:$true] %s26_s27 }
   0xb   :  { %29 = dma.hbm_to_vmem [thread:$0]  %s25_s21, 128, %s27_s27, [#allocation3]  }
   0xc   :  { %s47_s28 = sshll.u32 %s695_s3, 4  ;;  %s71_s0 = sshll.u32 %s795_s4, 4  ;;  %s48_s28 = int_to_ptr.vmem [resolvable:$true] %s47_s28  ;;  %s72_s0 = int_to_ptr.hbm [resolvable:$true] %s71_s0 }
   0xd   :  { %53 = dma.hbm_to_vmem [thread:$0]  %s46_s25, 128, %s48_s28, [#allocation6], %s692_s1, %s692_s1, %s693_s22  }
   0xe   :  { %s696_s10 = smov [#allocation10]   ;;  %s697_s12 = smov 128  }
   0xf   :  { %s73_s11 = sshll.u32 %s696_s10, 4  ;;  %s698_s13 = smov 8   ;;  %s74_s11 = int_to_ptr.vmem [resolvable:$true] %s73_s11 }
  0x10   :  { %79 = dma.hbm_to_vmem [thread:$0]  %s72_s0, 2048, %s74_s11, [#allocation9], %s697_s12, %s697_s12, %s698_s13  }
  0x11   :  { %682 = dma.done.wait [#allocation3], 128  }
  0x12   :  { %683 = vsyncadd [#allocation3], 4294967168 }
  0x13   :  { %684 = dma.done.wait [#allocation6], 144  }
  0x14   :  { %685 = vsyncadd [#allocation6], 4294967152 }
  0x15   :  { %686 = dma.done.wait [#allocation9], 3072  }
  0x16   :  { %687 = vsyncadd [#allocation9], 4294964224  ;;  %v496_v0 = vld [vmem:[#allocation7] sm:$0xff]  ;;  %v765_v1 = vld [vmem:[#allocation2] sm:$0xff]  ;;  %vm160_vm0 = vcmask 130048   ;;  %s379_s19 = sshll.u32 %s799_s8, 4  ;;  %s380_s19 = int_to_ptr.hbm [resolvable:$true] %s379_s19 }
  0x17   :  { %v531_v2 = vld [vmem:[#allocation5] ss:$0 sm:$0xff]  ;;  %v504_v3 = vld [vmem:[#allocation8 + $0x38] sm:$0xff]  ;;  %171 = vmatpush.bf16.msra.mxu0 %v496_v0  ;;  %v502_v7 = vld [vmem:[#allocation8 + $0x28] sm:$0xff]  ;;  %vm370_vm1 = vcmask 7168  }
  0x18   :  { %v768_v4 = vmul.f32 %v531_v2, %v765_v1  ;;  %230 = vmatpush.bf16.msra.mxu1 %v504_v3  ;;  %v503_v5 = vld [vmem:[#allocation8 + $0x30] sm:$0xff]  ;;  %v501_v8 = vld [vmem:[#allocation8 + $0x20] sm:$0xff]  ;;  %v500_v9 = vld [vmem:[#allocation8 + $0x18] sm:$0xff] }
  0x19   :  { %v499_v10 = vld [vmem:[#allocation8 + $0x10] sm:$0xff]  ;;  %v498_v11 = vld [vmem:[#allocation8 + $0x8] sm:$0xff]  ;;  %v497_v12 = vld [vmem:[#allocation8] sm:$0xff] }
  0x1a   :  { %v150_v6 = vpack.c.bf16 %v768_v4, %v768_v4  ;;  %v490_v13 = vld [vmem:[#allocation10 + $0x70] sm:$0xf]  ;;  %v520_v14 = vld [vmem:[#allocation10 + $0x74] sm:$0xf0]  ;;  %v519_v15 = vld [vmem:[#allocation10 + $0x74] sm:$0xf] }
  0x1b   :  { %v491_v16 = vor.u32 %v520_v14, %v490_v13  ;;  %v492_v17 = vld [vmem:[#allocation10 + $0x78] sm:$0xf0]  ;;  %v482_v18 = vld [vmem:[#allocation10 + $0x60] sm:$0xf]  ;;  %v518_v19 = vld [vmem:[#allocation10 + $0x64] sm:$0xf0] }
  0x1c   :  { %399 = vmatmul.msk.bf16.vlgmr.msra.gmra.mxu0 %vm160_vm0, %v150_v6  ;;  %231 = vmatpush.bf16.msra.mxu1 %v503_v5  ;;  %v495_v20 = vor.u32 %v519_v15, %v492_v17  ;;  %v517_v21 = vld [vmem:[#allocation10 + $0x64] sm:$0xf]  ;;  %v484_v22 = vld [vmem:[#allocation10 + $0x68] sm:$0xf0]  ;;  %v483_v23 = vor.u32 %v518_v19, %v482_v18  ;;  %v474_v25 = vld [vmem:[#allocation10 + $0x50] sm:$0xf] }
  0x1d   :  { %330 = vmatpush.bf16.msra.mxu2 %v491_v16  ;;  %v487_v24 = vor.u32 %v517_v21, %v484_v22  ;;  %v516_v26 = vld [vmem:[#allocation10 + $0x54] sm:$0xf0]  ;;  %v515_v27 = vld [vmem:[#allocation10 + $0x54] sm:$0xf]  ;;  %v476_v28 = vld [vmem:[#allocation10 + $0x58] sm:$0xf0] }
  0x1e   :  { %343 = vmatpush.bf16.msra.mxu3 %v495_v20  ;;  %v475_v29 = vor.u32 %v516_v26, %v474_v25  ;;  %v479_v30 = vor.u32 %v515_v27, %v476_v28  ;;  %v466_v31 = vld [vmem:[#allocation10 + $0x40] sm:$0xf]  ;;  %v514_v32 = vld [vmem:[#allocation10 + $0x44] sm:$0xf0]  ;;  %v513_v33 = vld [vmem:[#allocation10 + $0x44] sm:$0xf] }
  0x1f   :  { %v468_v34 = vld [vmem:[#allocation10 + $0x48] sm:$0xf0]  ;;  %v467_v35 = vor.u32 %v514_v32, %v466_v31  ;;  %v458_v37 = vld [vmem:[#allocation10 + $0x30] sm:$0xf]  ;;  %v512_v38 = vld [vmem:[#allocation10 + $0x34] sm:$0xf0] }
  0x20   :  { %232 = vmatpush.bf16.msra.mxu1 %v502_v7  ;;  %v471_v36 = vor.u32 %v513_v33, %v468_v34  ;;  %v511_v39 = vld [vmem:[#allocation10 + $0x34] sm:$0xf]  ;;  %v460_v40 = vld [vmem:[#allocation10 + $0x38] sm:$0xf0]  ;;  %v459_v41 = vor.u32 %v512_v38, %v458_v37  ;;  %v450_v43 = vld [vmem:[#allocation10 + $0x20] sm:$0xf] }
  0x21   :  { %331 = vmatpush.bf16.msra.mxu2 %v483_v23  ;;  %v463_v42 = vor.u32 %v511_v39, %v460_v40  ;;  %v510_v44 = vld [vmem:[#allocation10 + $0x24] sm:$0xf0]  ;;  %v509_v45 = vld [vmem:[#allocation10 + $0x24] sm:$0xf]  ;;  %v452_v46 = vld [vmem:[#allocation10 + $0x28] sm:$0xf0] }
  0x22   :  { %344 = vmatpush.bf16.msra.mxu3 %v487_v24  ;;  %v451_v47 = vor.u32 %v510_v44, %v450_v43  ;;  %v455_v48 = vor.u32 %v509_v45, %v452_v46  ;;  %v532_v49 = vld [vmem:[%s796_s5] ss:$0 sm:$0xff]  ;;  %v442_v55 = vld [vmem:[#allocation10 + $0x10] sm:$0xf]  ;;  %v508_v56 = vld [vmem:[#allocation10 + $0x14] sm:$0xf0] }
  0x23   :  { %v507_v57 = vld [vmem:[#allocation10 + $0x14] sm:$0xf]  ;;  %v443_v58 = vor.u32 %v508_v56, %v442_v55  ;;  %v444_v59 = vld [vmem:[#allocation10 + $0x18] sm:$0xf0]  ;;  %v434_v61 = vld [vmem:[#allocation10] sm:$0xf] }
  0x24   :  { %233 = vmatpush.bf16.msra.mxu1 %v501_v8  ;;  %v447_v60 = vor.u32 %v507_v57, %v444_v59  ;;  %v506_v62 = vld [vmem:[#allocation10 + $0x4] sm:$0xf0]  ;;  %v505_v63 = vld [vmem:[#allocation10 + $0x4] sm:$0xf]  ;;  %v436_v2 = vld [vmem:[#allocation10 + $0x8] sm:$0xf0] }
  0x25   :  { %332 = vmatpush.bf16.msra.mxu2 %v475_v29  ;;  %v435_v0 = vor.u32 %v506_v62, %v434_v61  ;;  %v439_v3 = vor.u32 %v505_v63, %v436_v2  ;;  %v533_v5 = vld [vmem:[%s797_s6] ss:$0 sm:$0xff]  ;;  %v145_v20 = vld [vmem:[#allocation5] sm:$0x1]  ;;  %s699_s6 = smov [#allocation11]  }
  0x26   :  { %345 = vmatpush.bf16.msra.mxu3 %v479_v30  ;;  %v357_v22 = vsub.f32 1.0, %v145_v20 }
  0x28   :  { %234 = vmatpush.bf16.msra.mxu1 %v500_v9  ;;  %v363_v26 = vperm.slane %v357_v22, 0 }
  0x29   :  { %333 = vmatpush.bf16.msra.mxu2 %v467_v35 }
  0x2a   :  { %346 = vmatpush.bf16.msra.mxu3 %v471_v36 }
  0x2c   :  { %235 = vmatpush.bf16.msra.mxu1 %v499_v10 }
  0x2d   :  { %334 = vmatpush.bf16.msra.mxu2 %v459_v41 }
  0x2e   :  { %347 = vmatpush.bf16.msra.mxu3 %v463_v42 }
  0x30   :  { %236 = vmatpush.bf16.msra.mxu1 %v498_v11  ;;  %v143_v11 = vld [vmem:[%s798_s7] sm:$0x3]  ;;  %s377_s7 = sshll.u32 %s699_s6, 4  ;;  %s378_s7 = int_to_ptr.vmem [resolvable:$true] %s377_s7 }
  0x31   :  { %335 = vmatpush.bf16.msra.mxu2 %v451_v47  ;;  %v247_v21 = vperm.slane %v143_v11, 1 }
  0x32   :  { %348 = vmatpush.bf16.msra.mxu3 %v455_v48 }
  0x34   :  { %237 = vmatpush.bf16.msra.mxu1 %v497_v12  ;;  %v246_v12 = vperm.slane %v143_v11, 0 }
  0x35   :  { %336 = vmatpush.bf16.msra.mxu2 %v443_v58 }
  0x36   :  { %349 = vmatpush.bf16.msra.mxu3 %v447_v60 }
  0x39   :  { %337 = vmatpush.bf16.msra.mxu2 %v435_v0 }
  0x3a   :  { %350 = vmatpush.bf16.msra.mxu3 %v439_v3 }
  0x99   :  { %v173_v50 = vpop.f32.mrf.mxu0 }
  0x9a   :  { %v174_v51 = vadd.f32 %v532_v49, %v173_v50 }
  0x9c   :  { %v177_v52 = vmax.f32 %v174_v51, 0.0 }
  0x9e   :  { %v178_v53 = vpack.c.bf16 %v177_v52, %v177_v52 }
  0xa0   :  { %238 = vmatmul.bf16.vlgmr.msra.gmra.mxu1 %v178_v53 }
  0xa1   :  { %v175_v54 = vpop.f32.mrf.mxu0 }
 0x11d   :  { %v239_v6 = vpop.f32.mrf.mxu1 }
 0x11e   :  { %v240_v7 = vadd.f32 %v533_v5, %v239_v6 }
 0x120   :  { %v243_v8 = vmax.f32 %v240_v7, 0.0 }
 0x122   :  { %v244_v9 = vpack.c.bf16 %v243_v8, %v243_v8 }
 0x124   :  { %338 = vmatmul.bf16.vlgmr.msra.gmra.mxu2 %v244_v9  ;;  %351 = vmatmul.bf16.vlgmr.msra.gmra.mxu3 %v244_v9 }
 0x125   :  { %v241_v10 = vpop.f32.mrf.mxu1 }
 0x1a7   :  { %v339_v13 = vpop.f32.mrf.mxu2  ;;  %v352_v14 = vpop.f32.mrf.mxu3 }
 0x1a8   :  { %v340_v15 = vadd.f32 %v339_v13, %v246_v12  ;;  %v353_v24 = vadd.f32 %v352_v14, %v247_v21 }
 0x1aa   :  { %534 = vtanh.f32 %v340_v15 }
 0x1af   :  { %v341_v16 = vpop.f32.mrf.mxu2  ;;  %v354_v17 = vpop.f32.mrf.mxu3 }
 0x1b0   :  { %v535_v18 = vpop.eup %534 }
 0x1b1   :  { %v358_v19 = vmul.f32 1.442695, %v535_v18  ;;  %368 = vadd.xlane.f32.xlu0 %v535_v18 }
 0x1b3   :  { %536 = vpow2.f32 %v358_v19 }
 0x1b9   :  { %v537_v23 = vpop.eup %536 }
 0x1ba   :  { %v360_v25 = vmul.f32 %v537_v23, %v765_v1 }
 0x1bc   :  { %v361_v27 = vadd.f32 %v360_v25, %v353_v24 }
 0x1be   :  { %v365_v28 = vmul.f32 %v363_v26, %v361_v27 }
 0x1c0   :  { %v366_v29 = vadd.f32 %v365_v28, %v768_v4 }
 0x1c2   :  { %367 = vst.msk [vmem:[#allocation11] sm:$0xff] %vm160_vm0, %v366_v29 }
 0x1c3   :  { %382 = dma.vmem_to_hbm [thread:$0]  %s378_s7, 128, %s380_s19, [#allocation4]  }
 0x224   :  { %v369_v30 = vpop.xlane.xlu0 %368 }
 0x225   :  { %371 = vst.msk [vmem:[%s800_s9] sm:$0xff] %vm370_vm1, %v369_v30 }
 0x226   :  { %688 = dma.done.wait [#allocation4], 128  }
 0x227   :  { %689 = vsyncadd [#allocation4], 4294967168 }
 0x228   :  { %391 = vsyncpa [#allocation3], 1 }
 0x229   :  { %392 = vsyncpa [#allocation6], 1 }
 0x22a   :  { %393 = vsyncpa [#allocation9], 1 }
 0x22b   :  { %394 = vsyncpa [#allocation4], 1 }

</bundles_post_ra>
